<compile_context>
chip_gen: v7x
topology: tpu7x:2x2x1
jax: 0.10.0
libtpu: 0.0.40
codegen_flags: <defaults>
</compile_context>

<pallas_src>
import functools

import jax
import jax.numpy as jnp
from jax.experimental import pallas as pl
from jax.experimental.pallas import tpu as pltpu


def _round_up(x, m):
    return ((x + m - 1) // m) * m


# Adjacency matrices larger than this (bf16 bytes) are row-tiled over the grid
# instead of kept fully resident; sized conservatively so a double-buffered
# resident adjacency still fits v5e's 16 MiB default scoped VMEM.
_ADJ_RESIDENT_BYTES = 4 * 1024 * 1024
_ROW_TILE = 256


# ----------------------------------------------------------------------------
# Fused Pallas kernel: all GCN layers + global_mean_pool + Linear head
# ----------------------------------------------------------------------------
def fused_gcn_kernel(adj_ref, x_ref, w_ref, scale_ref, shift_ref,
                     pool_ref, wlin_ref, blin_ref, out_ref,
                     act_ref, xw_ref):
    layer = pl.program_id(0)
    row = pl.program_id(1)
    n_layers = pl.num_programs(0)
    n_rows = pl.num_programs(1)
    tm = adj_ref.shape[0]

    # Load (padded) node features into the resident activation scratch.
    @pl.when(jnp.logical_and(layer == 0, row == 0))
    def _():
        act_ref[...] = x_ref[...]

    # Once per layer: dense feature transform  X @ W  (MXU, f32 accumulate).
    @pl.when(row == 0)
    def _():
        xw_ref[...] = jnp.dot(
            act_ref[...], w_ref[0],
            preferred_element_type=jnp.float32).astype(xw_ref.dtype)

    # Row-tiled aggregation A_hat[rows] @ (X W); folded bias + BN; ReLU.
    h = jnp.dot(adj_ref[...], xw_ref[...], preferred_element_type=jnp.float32)
    h = h * scale_ref[0] + shift_ref[0]
    start = pl.multiple_of(row * tm, tm)
    act_ref[pl.ds(start, tm), :] = jnp.maximum(h, 0.0).astype(act_ref.dtype)
    # TODO(synk): dropout omitted (identity in eval mode).

    # Final step: global_mean_pool (dense [G, N] matmul) + Linear head.
    @pl.when(jnp.logical_and(layer == n_layers - 1, row == n_rows - 1))
    def _():
        pooled = jnp.dot(pool_ref[...], act_ref[...],
                         preferred_element_type=jnp.float32)
        out_ref[...] = (
            jnp.dot(pooled.astype(wlin_ref.dtype), wlin_ref[...],
                    preferred_element_type=jnp.float32) + blin_ref[...])


def fused_gcn_forward(adj, pool, x, w_stack, scale_stack, shift_stack,
                      w_lin, b_lin):
    num_layers, d_pad, _ = w_stack.shape
    n_pad = adj.shape[0]
    g_pad = pool.shape[0]
    t_pad = w_lin.shape[1]

    # Resident adjacency when small; otherwise stream TM-row slabs per step.
    tm = n_pad if n_pad * n_pad * 2 <= _ADJ_RESIDENT_BYTES else _ROW_TILE
    assert n_pad % tm == 0
    n_rows = n_pad // tm
    # TODO(synk): for very large / sparse graphs, switch to a block-sparse
    # adjacency with scalar-prefetched nonzero-tile indices.

    flops = (num_layers * (2 * n_pad * d_pad * d_pad
                           + 2 * n_pad * n_pad * d_pad)
             + 2 * g_pad * n_pad * d_pad + 2 * g_pad * d_pad * t_pad)
    bytes_accessed = 2 * (n_pad * n_pad + num_layers * d_pad * d_pad
                          + 2 * n_pad * d_pad + g_pad * n_pad
                          + d_pad * t_pad) + 4 * g_pad * t_pad

    grid_spec = pltpu.PrefetchScalarGridSpec(
        num_scalar_prefetch=0,
        grid=(num_layers, n_rows),
        in_specs=[
            pl.BlockSpec((tm, n_pad), lambda l, r: (r, 0)),           # adj
            pl.BlockSpec((n_pad, d_pad), lambda l, r: (0, 0)),        # x
            pl.BlockSpec((1, d_pad, d_pad), lambda l, r: (l, 0, 0)),  # W_l
            pl.BlockSpec((1, 1, d_pad), lambda l, r: (l, 0, 0)),      # scale_l
            pl.BlockSpec((1, 1, d_pad), lambda l, r: (l, 0, 0)),      # shift_l
            pl.BlockSpec((g_pad, n_pad), lambda l, r: (0, 0)),        # pool
            pl.BlockSpec((d_pad, t_pad), lambda l, r: (0, 0)),        # w_lin
            pl.BlockSpec((1, t_pad), lambda l, r: (0, 0)),            # b_lin
        ],
        out_specs=pl.BlockSpec((g_pad, t_pad), lambda l, r: (0, 0)),
        scratch_shapes=[
            pltpu.VMEM((n_pad, d_pad), jnp.bfloat16),   # activations (all layers)
            pltpu.VMEM((n_pad, d_pad), jnp.bfloat16),   # X @ W of current layer
        ],
    )
    return pl.pallas_call(
        fused_gcn_kernel,
        grid_spec=grid_spec,
        out_shape=jax.ShapeDtypeStruct((g_pad, t_pad), jnp.float32),
        compiler_params=pltpu.CompilerParams(
            # The layer axis carries a loop dependency through the VMEM
            # activation scratch, so both grid axes stay sequential.
            dimension_semantics=("arbitrary", "arbitrary")),
        cost_estimate=pl.CostEstimate(flops=flops, transcendentals=0,
                                      bytes_accessed=int(bytes_accessed)),
    )(adj, x, w_stack, scale_stack, shift_stack, pool, w_lin, b_lin)


# ----------------------------------------------------------------------------
# Plain-JAX glue: normalized adjacency, pooling matrix, packing, params
# ----------------------------------------------------------------------------
def normalized_adjacency(edge_index, num_nodes):
    """A_hat = D^{-1/2} (A + I) D^{-1/2}   (GCNConv symmetric normalization)."""
    src, dst = edge_index[0], edge_index[1]
    adj = jnp.zeros((num_nodes, num_nodes), jnp.float32)
    adj = adj.at[dst, src].add(1.0)                       # sum duplicate edges
    adj = adj + jnp.eye(num_nodes, dtype=jnp.float32)     # self loops
    deg = jnp.sum(adj, axis=1)
    dinv = jnp.where(deg > 0, 1.0 / jnp.sqrt(deg), 0.0)
    return adj * dinv[:, None] * dinv[None, :]


def mean_pool_matrix(batch, num_graphs, num_nodes):
    onehot = (batch[None, :] == jnp.arange(num_graphs)[:, None]).astype(jnp.float32)
    counts = jnp.maximum(jnp.sum(onehot, axis=1, keepdims=True), 1.0)
    return onehot / counts                                 # [G, N]


def pack_inputs(params, adj, pool, x, num_layers):
    """Pad to lane-dense shapes, fold bias+BN, cast matmul operands to bf16."""
    n = adj.shape[0]
    g = pool.shape[0]
    f_in = x.shape[1]
    h = params["convs"][0][0].shape[1]
    t = params["linear"][0].shape[1]

    d_pad = _round_up(max(f_in, h), 128)
    t_pad = _round_up(t, 128)
    g_pad = _round_up(g, 8)
    n_pad = _round_up(n, 128)
    if n_pad * n_pad * 2 > _ADJ_RESIDENT_BYTES:
        n_pad = _round_up(n, _ROW_TILE)

    def pad2(a, r, c):
        return jnp.pad(a, ((0, r - a.shape[0]), (0, c - a.shape[1])))

    adj_p = pad2(adj, n_pad, n_pad).astype(jnp.bfloat16)
    x_p = pad2(x, n_pad, d_pad).astype(jnp.bfloat16)
    pool_p = pad2(pool, g_pad, n_pad).astype(jnp.bfloat16)

    w_list, scale_list, shift_list = [], [], []
    for i in range(num_layers):
        w, b = params["convs"][i]
        if i < num_layers - 1:
            bn_scale, bn_shift = params["bns"][i]
            scale = bn_scale                      # [1, H]
            shift = bn_shift + b * bn_scale       # fold conv bias into BN shift
        else:
            scale = jnp.ones_like(b)
            shift = b                             # last layer: bias only
        w_list.append(pad2(w, d_pad, d_pad).astype(jnp.bfloat16))
        scale_list.append(pad2(scale, 1, d_pad).astype(jnp.float32))
        shift_list.append(pad2(shift, 1, d_pad).astype(jnp.float32))
    w_stack = jnp.stack(w_list)                   # [L, d_pad, d_pad]
    scale_stack = jnp.stack(scale_list)           # [L, 1, d_pad]
    shift_stack = jnp.stack(shift_list)           # [L, 1, d_pad]

    w_lin, b_lin = params["linear"]
    w_lin_p = pad2(w_lin, d_pad, t_pad).astype(jnp.bfloat16)
    b_lin_p = pad2(b_lin, 1, t_pad).astype(jnp.float32)
    return (adj_p, pool_p, x_p, w_stack, scale_stack, shift_stack,
            w_lin_p, b_lin_p)


def init_params(key, num_node_features, hidden_channels, num_targets, num_layers):
    params = {"convs": [], "bns": []}
    dims = [num_node_features] + [hidden_channels] * num_layers
    for i in range(num_layers):
        key, kw = jax.random.split(key)
        fan_in, fan_out = dims[i], dims[i + 1]
        limit = jnp.sqrt(6.0 / (fan_in + fan_out))          # glorot
        w = jax.random.uniform(kw, (fan_in, fan_out), jnp.float32, -limit, limit)
        b = jnp.zeros((1, fan_out), jnp.float32)
        params["convs"].append((w, b))
    # BatchNorm1d for layers 0..num_layers-2, eval-mode running stats.
    eps = 1e-5
    for i in range(max(num_layers - 1, 0)):
        key, kg, kb = jax.random.split(key, 3)
        gamma = 1.0 + 0.1 * jax.random.normal(kg, (hidden_channels,), jnp.float32)
        beta = 0.1 * jax.random.normal(kb, (hidden_channels,), jnp.float32)
        running_mean = jnp.zeros((hidden_channels,), jnp.float32)
        running_var = jnp.ones((hidden_channels,), jnp.float32)
        scale = gamma / jnp.sqrt(running_var + eps)
        shift = beta - running_mean * scale
        params["bns"].append((scale.reshape(1, -1), shift.reshape(1, -1)))
    key, kw, kb = jax.random.split(key, 3)
    limit = 1.0 / jnp.sqrt(hidden_channels)
    w_lin = jax.random.uniform(kw, (hidden_channels, num_targets), jnp.float32,
                               -limit, limit)               # already [H, T]
    b_lin = jax.random.uniform(kb, (1, num_targets), jnp.float32, -limit, limit)
    params["linear"] = (w_lin, b_lin)
    return params


@functools.partial(jax.jit, static_argnames=("num_layers",))
def gcn_forward(params, adj, pool, x, num_layers):
    packed = pack_inputs(params, adj, pool, x, num_layers)
    out_padded = fused_gcn_forward(*packed)
    num_graphs = pool.shape[0]
    num_targets = params["linear"][0].shape[1]
    return out_padded[:num_graphs, :num_targets]


def gcn_forward_ref(params, adj, pool, x, num_layers):
    """Pure-JAX float32 reference for sanity checking."""
    for i in range(num_layers):
        w, b = params["convs"][i]
        h = adj @ (x @ w) + b
        if i < num_layers - 1:
            scale, shift = params["bns"][i]
            h = h * scale + shift
        x = jnp.maximum(h, 0.0)
    w_lin, b_lin = params["linear"]
    return (pool @ x) @ w_lin + b_lin


# ----------------------------------------------------------------------------
if __name__ == "__main__":
    num_node_features = 16
    hidden_channels = 32
    num_targets = 4
    num_layers = 3
    num_nodes = 24
    num_graphs = 2

    key = jax.random.PRNGKey(0)
    key, kx, ke = jax.random.split(key, 3)

    # Node features [N, F]
    x = jax.random.normal(kx, (num_nodes, num_node_features), jnp.float32)

    # Two 12-node ring graphs + a few random extra edges (made undirected).
    half = num_nodes // 2
    ring0_src = jnp.arange(half)
    ring0_dst = (ring0_src + 1) % half
    ring1_src = jnp.arange(half, num_nodes)
    ring1_dst = ((ring1_src - half + 1) % half) + half
    extra_src = jax.random.randint(ke, (6,), 0, half)
    extra_dst = (extra_src + 3) % half
    src = jnp.concatenate([ring0_src, ring1_src, extra_src])
    dst = jnp.concatenate([ring0_dst, ring1_dst, extra_dst])
    edge_index = jnp.stack(
        [jnp.concatenate([src, dst]), jnp.concatenate([dst, src])], axis=0
    )  # [2, E], undirected

    batch = jnp.concatenate(
        [jnp.zeros((half,), jnp.int32), jnp.ones((half,), jnp.int32)]
    )

    adj = normalized_adjacency(edge_index, num_nodes)
    pool = mean_pool_matrix(batch, num_graphs, num_nodes)
    params = init_params(key, num_node_features, hidden_channels, num_targets,
                         num_layers)

    out = gcn_forward(params, adj, pool, x, num_layers)
    out = jax.block_until_ready(out)

    ref = gcn_forward_ref(params, adj, pool, x, num_layers)
    assert out.shape == (num_graphs, num_targets)
    # bf16 matmuls with f32 accumulation vs f32 reference -> loose-ish tolerance.
    assert jnp.allclose(out, ref, atol=5e-2, rtol=5e-2), "mismatch vs JAX reference"

    print("KERNEL_OK")
</pallas_src>

<mosaic_0001>
module attributes {stable_mosaic.version = 11 : i64} {
  func.func @fused_gcn_kernel(%arg0: i32, %arg1: i32, %arg2: memref<128x128xbf16, #tpu.memory_space<vmem>>, %arg3: memref<128x128xbf16, #tpu.memory_space<vmem>>, %arg4: memref<1x128x128xbf16, #tpu.memory_space<vmem>>, %arg5: memref<1x1x128xf32, #tpu.memory_space<vmem>>, %arg6: memref<1x1x128xf32, #tpu.memory_space<vmem>>, %arg7: memref<8x128xbf16, #tpu.memory_space<vmem>>, %arg8: memref<128x128xbf16, #tpu.memory_space<vmem>>, %arg9: memref<1x128xf32, #tpu.memory_space<vmem>>, %arg10: memref<8x128xf32, #tpu.memory_space<vmem>>, %arg11: memref<128x128xbf16, #tpu.memory_space<vmem>>, %arg12: memref<128x128xbf16, #tpu.memory_space<vmem>>) attributes {dimension_semantics = [#tpu.dimension_semantics<arbitrary>, #tpu.dimension_semantics<arbitrary>], iteration_bounds = array<i64: 3, 1>, scalar_prefetch = 0 : i64, scratch_operands = 2 : i64, tpu.core_type = #tpu.core_type<tc>, window_params = [{transform_indices = @transform_0, window_bounds = array<i64: 128, 128>}, {pipeline_mode = #tpu.pipeline_mode<synchronous>, transform_indices = @transform_1, window_bounds = array<i64: 128, 128>}, {transform_indices = @transform_2, window_bounds = array<i64: 1, 128, 128>}, {transform_indices = @transform_3, window_bounds = array<i64: 1, 1, 128>}, {transform_indices = @transform_4, window_bounds = array<i64: 1, 1, 128>}, {pipeline_mode = #tpu.pipeline_mode<synchronous>, transform_indices = @transform_5, window_bounds = array<i64: 8, 128>}, {pipeline_mode = #tpu.pipeline_mode<synchronous>, transform_indices = @transform_6, window_bounds = array<i64: 128, 128>}, {pipeline_mode = #tpu.pipeline_mode<synchronous>, transform_indices = @transform_7, window_bounds = array<i64: 1, 128>}, {pipeline_mode = #tpu.pipeline_mode<synchronous>, transform_indices = @transform_8, window_bounds = array<i64: 8, 128>}]} {
    %c0_i32 = arith.constant 0 : i32
    %0 = arith.cmpi eq, %arg0, %c0_i32 : i32
    %c0_i32_0 = arith.constant 0 : i32
    %1 = arith.cmpi eq, %arg1, %c0_i32_0 : i32
    %2 = arith.andi %0, %1 : i1
    %3 = arith.extui %2 : i1 to i32
    %c0_i32_1 = arith.constant 0 : i32
    %4 = arith.cmpi ne, %3, %c0_i32_1 : i32
    scf.if %4 {
      %c0_17 = arith.constant 0 : index
      %c0_18 = arith.constant 0 : index
      %31 = vector.load %arg3[%c0_17, %c0_18] : memref<128x128xbf16, #tpu.memory_space<vmem>>, vector<128x128xbf16>
      %c0_19 = arith.constant 0 : index
      %c0_20 = arith.constant 0 : index
      %32 = vector.load %arg11[%c0_19, %c0_20] : memref<128x128xbf16, #tpu.memory_space<vmem>>, vector<128x128xbf16>
      tpu.vector_store %arg11[%c0_19, %c0_20], %31 {strides = array<i32>} : memref<128x128xbf16, #tpu.memory_space<vmem>>, vector<128x128xbf16>,
    } else {
    }
    %c0_i32_2 = arith.constant 0 : i32
    %5 = arith.cmpi eq, %arg1, %c0_i32_2 : i32
    %6 = arith.extui %5 : i1 to i32
    %c0_i32_3 = arith.constant 0 : i32
    %7 = arith.cmpi ne, %6, %c0_i32_3 : i32
    scf.if %7 {
      %c0_17 = arith.constant 0 : index
      %c0_18 = arith.constant 0 : index
      %31 = vector.load %arg11[%c0_17, %c0_18] : memref<128x128xbf16, #tpu.memory_space<vmem>>, vector<128x128xbf16>
      %c0_19 = arith.constant 0 : index
      %c0_20 = arith.constant 0 : index
      %c0_21 = arith.constant 0 : index
      %32 = vector.load %arg4[%c0_19, %c0_20, %c0_21] : memref<1x128x128xbf16, #tpu.memory_space<vmem>>, vector<1x128x128xbf16>
      %33 = vector.shape_cast %32 : vector<1x128x128xbf16> to vector<128x128xbf16>
      %cst_22 = arith.constant dense<0.000000e+00> : vector<128x128xf32>
      %34 = tpu.matmul %31, %33, %cst_22 {dimension_numbers = #tpu.dot_dimension_numbers<[1], [0], [0], [1], [0, 0, 1, 1], [], []>} : vector<128x128xbf16>, vector<128x128xbf16>, vector<128x128xf32> -> vector<128x128xf32>
      %35 = arith.truncf %34 : vector<128x128xf32> to vector<128x128xbf16>
      %c0_23 = arith.constant 0 : index
      %c0_24 = arith.constant 0 : index
      %36 = vector.load %arg12[%c0_23, %c0_24] : memref<128x128xbf16, #tpu.memory_space<vmem>>, vector<128x128xbf16>
      tpu.vector_store %arg12[%c0_23, %c0_24], %35 {strides = array<i32>} : memref<128x128xbf16, #tpu.memory_space<vmem>>, vector<128x128xbf16>,
    } else {
    }
    %c0 = arith.constant 0 : index
    %c0_4 = arith.constant 0 : index
    %8 = vector.load %arg2[%c0, %c0_4] : memref<128x128xbf16, #tpu.memory_space<vmem>>, vector<128x128xbf16>
    %c0_5 = arith.constant 0 : index
    %c0_6 = arith.constant 0 : index
    %9 = vector.load %arg12[%c0_5, %c0_6] : memref<128x128xbf16, #tpu.memory_space<vmem>>, vector<128x128xbf16>
    %cst = arith.constant dense<0.000000e+00> : vector<128x128xf32>
    %10 = tpu.matmul %8, %9, %cst {dimension_numbers = #tpu.dot_dimension_numbers<[1], [0], [0], [1], [0, 0, 1, 1], [], []>} : vector<128x128xbf16>, vector<128x128xbf16>, vector<128x128xf32> -> vector<128x128xf32>
    %c0_7 = arith.constant 0 : index
    %c0_8 = arith.constant 0 : index
    %c0_9 = arith.constant 0 : index
    %11 = vector.load %arg5[%c0_7, %c0_8, %c0_9] : memref<1x1x128xf32, #tpu.memory_space<vmem>>, vector<1x1x128xf32>
    %12 = vector.shape_cast %11 : vector<1x1x128xf32> to vector<1x128xf32>
    %13 = vector.broadcast %12 : vector<1x128xf32> to vector<128x128xf32>
    %14 = arith.mulf %10, %13 : vector<128x128xf32>
    %c0_10 = arith.constant 0 : index
    %c0_11 = arith.constant 0 : index
    %c0_12 = arith.constant 0 : index
    %15 = vector.load %arg6[%c0_10, %c0_11, %c0_12] : memref<1x1x128xf32, #tpu.memory_space<vmem>>, vector<1x1x128xf32>
    %16 = vector.shape_cast %15 : vector<1x1x128xf32> to vector<1x128xf32>
    %17 = vector.broadcast %16 : vector<1x128xf32> to vector<128x128xf32>
    %18 = arith.addf %14, %17 : vector<128x128xf32>
    %c128_i32 = arith.constant 128 : i32
    %19 = arith.muli %arg1, %c128_i32 : i32
    %20 = tpu.assume_multiple %19, 128 : i32
    %cst_13 = arith.constant 0.000000e+00 : f32
    %21 = vector.broadcast %cst_13 : f32 to vector<128x128xf32>
    %22 = arith.maximumf %18, %21 : vector<128x128xf32>
    %23 = arith.truncf %22 : vector<128x128xf32> to vector<128x128xbf16>
    %24 = arith.index_cast %20 : i32 to index
    %c0_14 = arith.constant 0 : index
    %25 = vector.load %arg11[%24, %c0_14] : memref<128x128xbf16, #tpu.memory_space<vmem>>, vector<128x128xbf16>
    tpu.vector_store %arg11[%24, %c0_14], %23 {strides = array<i32>} : memref<128x128xbf16, #tpu.memory_space<vmem>>, vector<128x128xbf16>,
    %c2_i32 = arith.constant 2 : i32
    %26 = arith.cmpi eq, %arg0, %c2_i32 : i32
    %c0_i32_15 = arith.constant 0 : i32
    %27 = arith.cmpi eq, %arg1, %c0_i32_15 : i32
    %28 = arith.andi %26, %27 : i1
    %29 = arith.extui %28 : i1 to i32
    %c0_i32_16 = arith.constant 0 : i32
    %30 = arith.cmpi ne, %29, %c0_i32_16 : i32
    scf.if %30 {
      %c0_17 = arith.constant 0 : index
      %c0_18 = arith.constant 0 : index
      %31 = vector.load %arg7[%c0_17, %c0_18] : memref<8x128xbf16, #tpu.memory_space<vmem>>, vector<8x128xbf16>
      %c0_19 = arith.constant 0 : index
      %c0_20 = arith.constant 0 : index
      %32 = vector.load %arg11[%c0_19, %c0_20] : memref<128x128xbf16, #tpu.memory_space<vmem>>, vector<128x128xbf16>
      %cst_21 = arith.constant dense<0.000000e+00> : vector<8x128xf32>
      %33 = tpu.matmul %31, %32, %cst_21 {dimension_numbers = #tpu.dot_dimension_numbers<[1], [0], [0], [1], [0, 0, 1, 1], [], []>} : vector<8x128xbf16>, vector<128x128xbf16>, vector<8x128xf32> -> vector<8x128xf32>
      %34 = arith.truncf %33 : vector<8x128xf32> to vector<8x128xbf16>
      %c0_22 = arith.constant 0 : index
      %c0_23 = arith.constant 0 : index
      %35 = vector.load %arg8[%c0_22, %c0_23] : memref<128x128xbf16, #tpu.memory_space<vmem>>, vector<128x128xbf16>
      %cst_24 = arith.constant dense<0.000000e+00> : vector<8x128xf32>
      %36 = tpu.matmul %34, %35, %cst_24 {dimension_numbers = #tpu.dot_dimension_numbers<[1], [0], [0], [1], [0, 0, 1, 1], [], []>} : vector<8x128xbf16>, vector<128x128xbf16>, vector<8x128xf32> -> vector<8x128xf32>
      %c0_25 = arith.constant 0 : index
      %c0_26 = arith.constant 0 : index
      %37 = vector.load %arg9[%c0_25, %c0_26] : memref<1x128xf32, #tpu.memory_space<vmem>>, vector<1x128xf32>
      %38 = vector.broadcast %37 : vector<1x128xf32> to vector<8x128xf32>
      %39 = arith.addf %36, %38 : vector<8x128xf32>
      %c0_27 = arith.constant 0 : index
      %c0_28 = arith.constant 0 : index
      %40 = vector.load %arg10[%c0_27, %c0_28] : memref<8x128xf32, #tpu.memory_space<vmem>>, vector<8x128xf32>
      tpu.vector_store %arg10[%c0_27, %c0_28], %39 {strides = array<i32>} : memref<8x128xf32, #tpu.memory_space<vmem>>, vector<8x128xf32>,
    } else {
    }
    return
  }
  func.func @transform_0(%arg0: i32, %arg1: i32) -> (i32, i32) {
    %c0_i32 = arith.constant 0 : i32
    %c0_i32_0 = arith.constant 0 : i32
    return %arg1, %c0_i32 : i32, i32
  }
  func.func @transform_1(%arg0: i32, %arg1: i32) -> (i32, i32) {
    %c0_i32 = arith.constant 0 : i32
    %c0_i32_0 = arith.constant 0 : i32
    %c0_i32_1 = arith.constant 0 : i32
    return %c0_i32, %c0_i32_0 : i32, i32
  }
  func.func @transform_2(%arg0: i32, %arg1: i32) -> (i32, i32, i32) {
    %c0_i32 = arith.constant 0 : i32
    %c0_i32_0 = arith.constant 0 : i32
    %c0_i32_1 = arith.constant 0 : i32
    return %arg0, %c0_i32, %c0_i32_0 : i32, i32, i32
  }
  func.func @transform_3(%arg0: i32, %arg1: i32) -> (i32, i32, i32) {
    %c0_i32 = arith.constant 0 : i32
    %c0_i32_0 = arith.constant 0 : i32
    %c0_i32_1 = arith.constant 0 : i32
    return %arg0, %c0_i32, %c0_i32_0 : i32, i32, i32
  }
  func.func @transform_4(%arg0: i32, %arg1: i32) -> (i32, i32, i32) {
    %c0_i32 = arith.constant 0 : i32
    %c0_i32_0 = arith.constant 0 : i32
    %c0_i32_1 = arith.constant 0 : i32
    return %arg0, %c0_i32, %c0_i32_0 : i32, i32, i32
  }
  func.func @transform_5(%arg0: i32, %arg1: i32) -> (i32, i32) {
    %c0_i32 = arith.constant 0 : i32
    %c0_i32_0 = arith.constant 0 : i32
    %c0_i32_1 = arith.constant 0 : i32
    return %c0_i32, %c0_i32_0 : i32, i32
  }
  func.func @transform_6(%arg0: i32, %arg1: i32) -> (i32, i32) {
    %c0_i32 = arith.constant 0 : i32
    %c0_i32_0 = arith.constant 0 : i32
    %c0_i32_1 = arith.constant 0 : i32
    return %c0_i32, %c0_i32_0 : i32, i32
  }
  func.func @transform_7(%arg0: i32, %arg1: i32) -> (i32, i32) {
    %c0_i32 = arith.constant 0 : i32
    %c0_i32_0 = arith.constant 0 : i32
    %c0_i32_1 = arith.constant 0 : i32
    return %c0_i32, %c0_i32_0 : i32, i32
  }
  func.func @transform_8(%arg0: i32, %arg1: i32) -> (i32, i32) {
    %c0_i32 = arith.constant 0 : i32
    %c0_i32_0 = arith.constant 0 : i32
    %c0_i32_1 = arith.constant 0 : i32
    return %c0_i32, %c0_i32_0 : i32, i32
  }
}

</mosaic_0001>

<bundles_post_ra>
// kernel: gcn_forward.1
= control target key start
LH: loop header
LB: loop body
LE: loop exit
PB: predicated region body
PF: predicated region fallthrough
CT: control target
= control target key end

     0   :  { %s1443_s27 = smov 0   ;;  %s1445_s28 = smov 0   ;;  %s1629_s0 = inlined_call_operand.vmem [shape: bf16[128,128], index: 0, kind: input, shape index: {}]   ;;  %s1630_s1 = inlined_call_operand.vmem [shape: bf16[128,128], index: 1, kind: input, shape index: {}]   ;;  %s1631_s2 = inlined_call_operand.vmem [shape: bf16[3,128,128], index: 2, kind: input, shape index: {}]   ;;  %s1632_s3 = inlined_call_operand.vmem [shape: f32[3,1,128], index: 3, kind: input, shape index: {}]   ;;  %s1633_s4 = inlined_call_operand.vmem [shape: f32[3,1,128], index: 4, kind: input, shape index: {}]   ;;  %s1634_s5 = inlined_call_operand.vmem [shape: bf16[8,128], index: 5, kind: input, shape index: {}]   ;;  %s1635_s6 = inlined_call_operand.vmem [shape: bf16[128,128], index: 6, kind: input, shape index: {}]   ;;  %s1636_s7 = inlined_call_operand.vmem [shape: f32[1,128], index: 7, kind: input, shape index: {}]   ;;  %s1637_s8 = inlined_call_operand.vmem [shape: f32[8,128], index: 8, kind: output, shape index: {}]  }
   0x1   :  { %s1447_s29 = smov 0  }
   0x2 LB: > { %s30_s30 = sadd.s32 1, %s1390_s28  ;;  %p1115_p0 = scmp.ge.s32.totalorder %s1394_s29, 1  ;;  %s1394_s29 = sphi %s1447_s29, %s18_s29   ;;  %s1390_s28 = sphi %s1445_s28, %s1639_s28   ;;  %s1386_s27 = sphi %s1443_s27, %s1638_s27  }
   0x3   : > { %p32_p1 = scmp.ge.s32.totalorder %s30_s30, 3  ;;  %p296_p2 = scmp.lt.s32.totalorder %s1394_s29, 4 }
   0x5   : > { %s1641_s30 = smov (%p32_p1, %s30_s30), 0  ;;  %p297_p3 = pnand %p1115_p0, %p296_p2 }
   0x6   : > { %p342_p4 = scmp.lt.s32.totalorder (!%p297_p3), %s1386_s27, 2  ;;  %p354_p5 = scmp.eq.s32.totalorder (!%p297_p3), %s1386_s27, 0 }
   0x7   : > { %300 = sbr.rel (%p297_p3) target bundleno = 1000 (0x3e8), region = 52 }
   0xe   : > { %s1466_s9 = scalar_select %p342_p4, %s1386_s27, 2 }
   0xf   : > { %359 = sbr.rel (!%p354_p5) target bundleno = 22 (0x16), region = 56  ;;  %v1340_v0 = vld [vmem:[%s1630_s1] sm:$0xff] (%p354_p5)   ;;  %v1341_v1 = vld [vmem:[%s1630_s1 + $0x8] sm:$0xff] (%p354_p5)   ;;  %v1342_v2 = vld [vmem:[%s1630_s1 + $0x10] sm:$0xff] (%p354_p5)  }
  0x10   : > { %s1157_s10 = sshll.u32 %s1466_s9, 6  ;;  %s349_s13 = scalar_lea.vmem %s1632_s3, %s1466_s9  ;;  %424 = vst [vmem:[#allocation2] sm:$0xff] (%p354_p5), %v1340_v0  ;;  %425 = vst [vmem:[#allocation2 + $0x8] sm:$0xff] (%p354_p5), %v1341_v1  ;;  %v1343_v3 = vld [vmem:[%s1630_s1 + $0x18] sm:$0xff] (%p354_p5)   ;;  %v1344_v4 = vld [vmem:[%s1630_s1 + $0x20] sm:$0xff] (%p354_p5)  }
  0x11   : > { %s1476_s16 = scalar_lea.vmem %s1631_s2, %s1157_s10  ;;  %s352_s19 = scalar_lea.vmem %s1633_s4, %s1466_s9  ;;  %426 = vst [vmem:[#allocation2 + $0x10] sm:$0xff] (%p354_p5), %v1342_v2  ;;  %427 = vst [vmem:[#allocation2 + $0x18] sm:$0xff] (%p354_p5), %v1343_v3  ;;  %v1345_v5 = vld [vmem:[%s1630_s1 + $0x28] sm:$0xff] (%p354_p5)   ;;  %v1346_v6 = vld [vmem:[%s1630_s1 + $0x30] sm:$0xff] (%p354_p5)  }
  0x12   : > { %428 = vst [vmem:[#allocation2 + $0x20] sm:$0xff] (%p354_p5), %v1344_v4  ;;  %429 = vst [vmem:[#allocation2 + $0x28] sm:$0xff] (%p354_p5), %v1345_v5  ;;  %v1347_v7 = vld [vmem:[%s1630_s1 + $0x38] sm:$0xff] (%p354_p5)  }
  0x13   : > { %430 = vst [vmem:[#allocation2 + $0x30] sm:$0xff] (%p354_p5), %v1346_v6  ;;  %431 = vst [vmem:[#allocation2 + $0x38] sm:$0xff] (%p354_p5), %v1347_v7 }
  0x16 PF: > { %v1348_v8 = vld [vmem:[%s1476_s16] sm:$0xff]   ;;  %v1349_v9 = vld [vmem:[%s1476_s16 + $0x8] sm:$0xff]   ;;  %v1350_v10 = vld [vmem:[%s1476_s16 + $0x10] sm:$0xff]   ;;  %p872_p6 = scmp.eq.s32.totalorder %s1386_s27, 2 }
  0x17   : > { %1210 = vmatprep.subr.bf16.mxu0 %v1348_v8  ;;  %v1351_v11 = vld [vmem:[%s1476_s16 + $0x18] sm:$0xff]   ;;  %v435_v12 = vld [vmem:[#allocation2] sm:$0xff]  ;;  %v1353_v14 = vld [vmem:[%s1476_s16 + $0x28] sm:$0xff]   ;;  %vm1397_vm0 = vmmov (%p872_p6), 0  }
  0x18   : > { %1211 = vmatpush3.bf16.msra.mxu0 %v1348_v8  ;;  %1226 = vmatprep.mubr.bf16.mxu0 %v435_v12  ;;  %v1352_v13 = vld [vmem:[%s1476_s16 + $0x20] sm:$0xff]   ;;  %v1354_v15 = vld [vmem:[%s1476_s16 + $0x30] sm:$0xff]   ;;  %v1355_v16 = vld [vmem:[%s1476_s16 + $0x38] sm:$0xff]  }
  0x19   : > { %1212 = vmatprep.subr.bf16.mxu0 %v1349_v9  ;;  %v436_v17 = vld [vmem:[#allocation2 + $0x8] sm:$0xff]  ;;  %v437_v18 = vld [vmem:[#allocation2 + $0x10] sm:$0xff]  ;;  %v438_v19 = vld [vmem:[#allocation2 + $0x18] sm:$0xff] }
  0x1a   : > { %v439_v20 = vld [vmem:[#allocation2 + $0x20] sm:$0xff]  ;;  %v440_v21 = vld [vmem:[#allocation2 + $0x28] sm:$0xff]  ;;  %v441_v22 = vld [vmem:[#allocation2 + $0x30] sm:$0xff] }
  0x1b   : > { %v442_v23 = vld [vmem:[#allocation2 + $0x38] sm:$0xff]  ;;  %v1356_v24 = vld [vmem:[%s1629_s0] sm:$0xff]   ;;  %v1357_v49 = vld [vmem:[%s1629_s0 + $0x8] sm:$0xff]  }
  0x1c   : > { %1213 = vmatpush3.bf16.msra.mxu0 %v1349_v9  ;;  %1258 = vmatprep.mubr.bf16.mxu1 %v1356_v24  ;;  %v1358_v50 = vld [vmem:[%s1629_s0 + $0x10] sm:$0xff]   ;;  %v1359_v51 = vld [vmem:[%s1629_s0 + $0x18] sm:$0xff]   ;;  %v1360_v52 = vld [vmem:[%s1629_s0 + $0x20] sm:$0xff]  }
  0x1d   : > { %1214 = vmatprep.subr.bf16.mxu0 %v1350_v10  ;;  %v1361_v53 = vld [vmem:[%s1629_s0 + $0x28] sm:$0xff]   ;;  %v1362_v54 = vld [vmem:[%s1629_s0 + $0x30] sm:$0xff]   ;;  %v1363_v55 = vld [vmem:[%s1629_s0 + $0x38] sm:$0xff]  }
  0x1e   : > { %v1544_v56 = vld [vmem:[%s349_s13] ss:$0 sm:$0xff] }
  0x1f   : > { %v1551_v58 = vld [vmem:[%s352_s19] ss:$0 sm:$0xff] }
  0x20   : > { %1215 = vmatpush3.bf16.msra.mxu0 %v1350_v10 }
  0x21   : > { %1216 = vmatprep.subr.bf16.mxu0 %v1351_v11 }
  0x24   : > { %1217 = vmatpush3.bf16.msra.mxu0 %v1351_v11 }
  0x25   : > { %1218 = vmatprep.subr.bf16.mxu0 %v1352_v13 }
  0x28   : > { %1219 = vmatpush3.bf16.msra.mxu0 %v1352_v13 }
  0x29   : > { %1220 = vmatprep.subr.bf16.mxu0 %v1353_v14 }
  0x2c   : > { %1221 = vmatpush3.bf16.msra.mxu0 %v1353_v14 }
  0x2d   : > { %1222 = vmatprep.subr.bf16.mxu0 %v1354_v15 }
  0x30   : > { %1223 = vmatpush3.bf16.msra.mxu0 %v1354_v15 }
  0x31   : > { %1224 = vmatprep.subr.bf16.mxu0 %v1355_v16 }
  0x34   : > { %1225 = vmatpush3.bf16.msra.mxu0 %v1355_v16 }
  0x37   : > { %1227 = vmatmul.mubr.bf16.vlgmr.msra.gmra.mrb[0].mxu0 %v436_v17 }
  0x38   : > { %1230 = vmatprep.mubr.bf16.mxu0 %v437_v18 }
  0x3f   : > { %1231 = vmatmul.mubr.bf16.gmra.mrb[4].mxu0 %v438_v19 }
  0x40   : > { %1234 = vmatprep.mubr.bf16.mxu0 %v439_v20 }
  0x47   : > { %1235 = vmatmul.mubr.bf16.gmra.mrb[8].mxu0 %v440_v21 }
  0x48   : > { %1238 = vmatprep.mubr.bf16.mxu0 %v441_v22 }
  0x4f   : > { %1239 = vmatmul.mubr.bf16.gmra.mrb[12].mxu0 %v442_v23 }
 0x10a   : > { %v1228_v25 = vpop.f32.mrb[0].mxu0 }
 0x10b   : > { %v541_v26 = vpop.f32.mrb[1].mxu0 }
 0x10c   : > { %v1229_v27 = vpop.f32.mrb[2].mxu0 }
 0x10d   : > { %v605_v28 = vpack.c.bf16 %v1229_v27, %v1228_v25  ;;  %v544_v29 = vpop.f32.mrb[3].mxu0 }
 0x10e   : > { %v604_v30 = vpack.c.bf16 %v544_v29, %v541_v26 }
 0x110   : > { %1242 = vmatprep.subr.bf16.mxu1 %v604_v30 }
 0x111   : > { %1243 = vmatpush3.bf16.msra.mxu1 %v604_v30 }
 0x112   : > { %v1232_v31 = vpop.f32.mrb[4].mxu0  ;;  %1244 = vmatprep.subr.bf16.mxu1 %v605_v28 }
 0x113   : > { %v557_v32 = vpop.f32.mrb[5].mxu0 }
 0x114   : > { %v1233_v33 = vpop.f32.mrb[6].mxu0 }
 0x115   : > { %v607_v34 = vpack.c.bf16 %v1233_v33, %v1232_v31  ;;  %v560_v35 = vpop.f32.mrb[7].mxu0  ;;  %1245 = vmatpush3.bf16.msra.mxu1 %v605_v28 }
 0x116   : > { %v606_v36 = vpack.c.bf16 %v560_v35, %v557_v32 }
 0x118   : > { %1246 = vmatprep.subr.bf16.mxu1 %v606_v36 }
 0x119   : > { %1247 = vmatpush3.bf16.msra.mxu1 %v606_v36 }
 0x11a   : > { %v1236_v37 = vpop.f32.mrb[8].mxu0  ;;  %1248 = vmatprep.subr.bf16.mxu1 %v607_v34 }
 0x11b   : > { %v573_v38 = vpop.f32.mrb[9].mxu0 }
 0x11c   : > { %v1237_v39 = vpop.f32.mrb[10].mxu0 }
 0x11d   : > { %v609_v40 = vpack.c.bf16 %v1237_v39, %v1236_v37  ;;  %v576_v41 = vpop.f32.mrb[11].mxu0  ;;  %1249 = vmatpush3.bf16.msra.mxu1 %v607_v34 }
 0x11e   : > { %v608_v42 = vpack.c.bf16 %v576_v41, %v573_v38 }
 0x120   : > { %1250 = vmatprep.subr.bf16.mxu1 %v608_v42 }
 0x121   : > { %1251 = vmatpush3.bf16.msra.mxu1 %v608_v42 }
 0x122   : > { %v1240_v43 = vpop.f32.mrb[12].mxu0  ;;  %1252 = vmatprep.subr.bf16.mxu1 %v609_v40 }
 0x123   : > { %v589_v44 = vpop.f32.mrb[13].mxu0 }
 0x124   : > { %v1241_v45 = vpop.f32.mrb[14].mxu0 }
 0x125   : > { %v611_v46 = vpack.c.bf16 %v1241_v45, %v1240_v43  ;;  %v592_v47 = vpop.f32.mrb[15].mxu0  ;;  %1253 = vmatpush3.bf16.msra.mxu1 %v609_v40 }
 0x126   : > { %v610_v48 = vpack.c.bf16 %v592_v47, %v589_v44 }
 0x128   : > { %1254 = vmatprep.subr.bf16.mxu1 %v610_v48 }
 0x129   : > { %1255 = vmatpush3.bf16.msra.mxu1 %v610_v48 }
 0x12a   : > { %1256 = vmatprep.subr.bf16.mxu1 %v611_v46 }
 0x12d   : > { %1257 = vmatpush3.bf16.msra.mxu1 %v611_v46 }
 0x130   : > { %1259 = vmatmul.mubr.bf16.vlgmr.msra.gmra.mrb[0].mxu1 %v1357_v49 }
 0x131   : > { %1262 = vmatprep.mubr.bf16.mxu1 %v1358_v50 }
 0x138   : > { %1263 = vmatmul.mubr.bf16.gmra.mrb[4].mxu1 %v1359_v51 }
 0x139   : > { %1266 = vmatprep.mubr.bf16.mxu1 %v1360_v52 }
 0x140   : > { %1267 = vmatmul.mubr.bf16.gmra.mrb[8].mxu1 %v1361_v53 }
 0x141   : > { %1270 = vmatprep.mubr.bf16.mxu1 %v1362_v54 }
 0x148   : > { %1271 = vmatmul.mubr.bf16.gmra.mrb[12].mxu1 %v1363_v55 }
 0x203   : > { %v1260_v57 = vpop.f32.mrb[0].mxu1 }
 0x204   : > { %v798_v59 = vmul.f32 %v1260_v57, %v1544_v56  ;;  %v726_v60 = vpop.f32.mrb[1].mxu1 }
 0x205   : > { %v796_v61 = vmul.f32 %v1544_v56, %v726_v60  ;;  %v1261_v62 = vpop.f32.mrb[2].mxu1 }
 0x206   : > { %v821_v63 = vadd.f32 %v1551_v58, %v798_v59  ;;  %v799_v0 = vmul.f32 %v1261_v62, %v1544_v56  ;;  %v729_v1 = vpop.f32.mrb[3].mxu1 }
 0x207   : > { %v819_v2 = vadd.f32 %v1551_v58, %v796_v61  ;;  %v797_v3 = vmul.f32 %v1544_v56, %v729_v1 }
 0x208   : > { %v822_v4 = vadd.f32 %v1551_v58, %v799_v0  ;;  %v838_v6 = vmax.f32 %v821_v63, 0.0 }
 0x209   : > { %v820_v5 = vadd.f32 %v1551_v58, %v797_v3  ;;  %v836_v8 = vmax.f32 %v819_v2, 0.0 }
 0x20a   : > { %v839_v7 = vmax.f32 %v822_v4, 0.0 }
 0x20b   : > { %v837_v9 = vmax.f32 %v820_v5, 0.0  ;;  %v1264_v10 = vpop.f32.mrb[4].mxu1  ;;  %v1396_v5 = vmov (%p872_p6), 0.0  }
 0x20c   : > { %v853_v11 = vpack.c.bf16 %v839_v7, %v838_v6  ;;  %v802_v12 = vmul.f32 %v1264_v10, %v1544_v56  ;;  %v742_v13 = vpop.f32.mrb[5].mxu1  ;;  %1274 = vmatprep.subr.bf16.mxu0 (%p872_p6), %v1396_v5  ;;  %1290 = vmatprep.mubr.msk.bf16.mxu0 (%p872_p6), %vm1397_vm0, %v1396_v5  ;;  %v1365_v6 = vld [vmem:[%s1635_s6 + $0x8] sm:$0xff] (%p872_p6)   ;;  %v1367_v10 = vld [vmem:[%s1635_s6 + $0x18] sm:$0xff] (%p872_p6)  }
 0x20d   : > { %v852_v14 = vpack.c.bf16 %v837_v9, %v836_v8  ;;  %v800_v15 = vmul.f32 %v1544_v56, %v742_v13  ;;  %v1265_v16 = vpop.f32.mrb[6].mxu1  ;;  %1294 = vmatprep.subr.bf16.mxu1 (%p872_p6), %v1396_v5  ;;  %1310 = vmatprep.mubr.msk.bf16.mxu1 (%p872_p6), %vm1397_vm0, %v1396_v5  ;;  %v1366_v8 = vld [vmem:[%s1635_s6 + $0x10] sm:$0xff] (%p872_p6)  }
 0x20e   : > { %865 = vst [vmem:[#allocation2 + $0x8] sm:$0xff] %v853_v11  ;;  %v825_v17 = vadd.f32 %v1551_v58, %v802_v12  ;;  %v803_v18 = vmul.f32 %v1265_v16, %v1544_v56  ;;  %v745_v19 = vpop.f32.mrb[7].mxu1  ;;  %v1368_v12 = vld [vmem:[%s1635_s6 + $0x20] sm:$0xff] (%p872_p6)   ;;  %v1370_v16 = vld [vmem:[%s1635_s6 + $0x30] sm:$0xff] (%p872_p6)  }
 0x20f   : > { %864 = vst [vmem:[#allocation2] sm:$0xff] %v852_v14  ;;  %v823_v20 = vadd.f32 %v1551_v58, %v800_v15  ;;  %v801_v21 = vmul.f32 %v1544_v56, %v745_v19  ;;  %v1369_v14 = vld [vmem:[%s1635_s6 + $0x28] sm:$0xff] (%p872_p6)   ;;  %v1371_v19 = vld [vmem:[%s1635_s6 + $0x38] sm:$0xff] (%p872_p6)  }
 0x210   : > { %v826_v22 = vadd.f32 %v1551_v58, %v803_v18  ;;  %v842_v24 = vmax.f32 %v825_v17, 0.0  ;;  %v877_v18 = vld [vmem:[%s1634_s5] sm:$0xf] (%p872_p6) }
 0x211   : > { %v824_v23 = vadd.f32 %v1551_v58, %v801_v21  ;;  %v840_v26 = vmax.f32 %v823_v20, 0.0 }
 0x212   : > { %v843_v25 = vmax.f32 %v826_v22, 0.0 }
 0x213   : > { %v841_v27 = vmax.f32 %v824_v23, 0.0  ;;  %v1268_v28 = vpop.f32.mrb[8].mxu1 }
 0x214   : > { %v855_v29 = vpack.c.bf16 %v843_v25, %v842_v24  ;;  %v806_v30 = vmul.f32 %v1268_v28, %v1544_v56  ;;  %v758_v31 = vpop.f32.mrb[9].mxu1  ;;  %v1146_v25 = vld [vmem:[%s1636_s7] ss:$0 sm:$0xff] (%p872_p6) }
 0x215   : > { %v854_v32 = vpack.c.bf16 %v841_v27, %v840_v26  ;;  %v804_v33 = vmul.f32 %v1544_v56, %v758_v31  ;;  %v1269_v34 = vpop.f32.mrb[10].mxu1 }
 0x216   : > { %867 = vst [vmem:[#allocation2 + $0x18] sm:$0xff] %v855_v29  ;;  %v829_v35 = vadd.f32 %v1551_v58, %v806_v30  ;;  %v807_v36 = vmul.f32 %v1269_v34, %v1544_v56  ;;  %v761_v37 = vpop.f32.mrb[11].mxu1  ;;  %v878_v4 = vld [vmem:[#allocation2] sm:$0xff] (%p872_p6) }
 0x217   : > { %866 = vst [vmem:[#allocation2 + $0x10] sm:$0xff] %v854_v32  ;;  %v827_v38 = vadd.f32 %v1551_v58, %v804_v33  ;;  %v805_v39 = vmul.f32 %v1544_v56, %v761_v37  ;;  %1275 = vmatpush3.bf16.msra.mxu0 (%p872_p6), %v878_v4 }
 0x218   : > { %v830_v40 = vadd.f32 %v1551_v58, %v807_v36  ;;  %v846_v42 = vmax.f32 %v829_v35, 0.0  ;;  %1276 = vmatprep.subr.bf16.mxu0 (%p872_p6), %v1396_v5 }
 0x219   : > { %v828_v41 = vadd.f32 %v1551_v58, %v805_v39  ;;  %v844_v44 = vmax.f32 %v827_v38, 0.0 }
 0x21a   : > { %v847_v43 = vmax.f32 %v830_v40, 0.0 }
 0x21b   : > { %v845_v45 = vmax.f32 %v828_v41, 0.0  ;;  %v1272_v46 = vpop.f32.mrb[12].mxu1 }
 0x21c   : > { %v857_v47 = vpack.c.bf16 %v847_v43, %v846_v42  ;;  %v810_v48 = vmul.f32 %v1272_v46, %v1544_v56  ;;  %v774_v49 = vpop.f32.mrb[13].mxu1 }
 0x21d   : > { %v856_v50 = vpack.c.bf16 %v845_v45, %v844_v44  ;;  %v808_v51 = vmul.f32 %v1544_v56, %v774_v49  ;;  %v1273_v52 = vpop.f32.mrb[14].mxu1  ;;  %v881_v9 = vld [vmem:[#allocation2 + $0x18] sm:$0xff] (%p872_p6) }
 0x21e   : > { %869 = vst [vmem:[#allocation2 + $0x28] sm:$0xff] %v857_v47  ;;  %v833_v53 = vadd.f32 %v1551_v58, %v810_v48  ;;  %v811_v54 = vmul.f32 %v1273_v52, %v1544_v56  ;;  %v777_v55 = vpop.f32.mrb[15].mxu1  ;;  %v880_v7 = vld [vmem:[#allocation2 + $0x10] sm:$0xff] (%p872_p6) }
 0x21f   : > { %868 = vst [vmem:[#allocation2 + $0x20] sm:$0xff] %v856_v50  ;;  %v831_v57 = vadd.f32 %v1551_v58, %v808_v51  ;;  %v809_v59 = vmul.f32 %v1544_v56, %v777_v55  ;;  %v879_v56 = vld [vmem:[#allocation2 + $0x8] sm:$0xff] (%p872_p6) }
 0x220   : > { %v834_v60 = vadd.f32 %v1551_v58, %v811_v54  ;;  %v850_v62 = vmax.f32 %v833_v53, 0.0  ;;  %1277 = vmatpush3.bf16.msra.mxu0 (%p872_p6), %v879_v56 }
 0x221   : > { %v832_v61 = vadd.f32 %v1551_v58, %v809_v59  ;;  %v848_v0 = vmax.f32 %v831_v57, 0.0  ;;  %876 = sbr.rel (!%p872_p6) target bundleno = 1000 (0x3e8), region = 64  ;;  %v1364_v58 = vld [vmem:[%s1635_s6] sm:$0xff] (%p872_p6)   ;;  %1278 = vmatprep.subr.bf16.mxu0 (%p872_p6), %v1396_v5 }
 0x222   : > { %v851_v63 = vmax.f32 %v834_v60, 0.0  ;;  %1295 = vmatpush3.bf16.msra.mxu1 (%p872_p6), %v1364_v58 }
 0x223   : > { %v849_v1 = vmax.f32 %v832_v61, 0.0  ;;  %1296 = vmatprep.subr.bf16.mxu1 (%p872_p6), %v1396_v5 }
 0x224   : > { %v859_v2 = vpack.c.bf16 %v851_v63, %v850_v62  ;;  %1279 = vmatpush3.bf16.msra.mxu0 (%p872_p6), %v880_v7 }
 0x225   : > { %v858_v3 = vpack.c.bf16 %v849_v1, %v848_v0  ;;  %1280 = vmatprep.subr.bf16.mxu0 (%p872_p6), %v1396_v5  ;;  %v883_v13 = vld [vmem:[#allocation2 + $0x28] sm:$0xff] (%p872_p6) }
 0x226   : > { %871 = vst [vmem:[#allocation2 + $0x38] sm:$0xff] %v859_v2  ;;  %1297 = vmatpush3.bf16.msra.mxu1 (%p872_p6), %v1365_v6  ;;  %v882_v11 = vld [vmem:[#allocation2 + $0x20] sm:$0xff] (%p872_p6) }
 0x227   : > { %870 = vst [vmem:[#allocation2 + $0x30] sm:$0xff] %v858_v3  ;;  %1298 = vmatprep.subr.bf16.mxu1 (%p872_p6), %v1396_v5 }
 0x228   : > { %1281 = vmatpush3.bf16.msra.mxu0 %v881_v9 }
 0x229   : > { %1282 = vmatprep.subr.bf16.mxu0 %v1396_v5 }
 0x22a   : > { %1299 = vmatpush3.bf16.msra.mxu1 %v1366_v8 }
 0x22b   : > { %1300 = vmatprep.subr.bf16.mxu1 %v1396_v5 }
 0x22c   : > { %1283 = vmatpush3.bf16.msra.mxu0 %v882_v11 }
 0x22d   : > { %1284 = vmatprep.subr.bf16.mxu0 %v1396_v5  ;;  %v885_v17 = vld [vmem:[#allocation2 + $0x38] sm:$0xff] }
 0x22e   : > { %1301 = vmatpush3.bf16.msra.mxu1 %v1367_v10  ;;  %v884_v15 = vld [vmem:[#allocation2 + $0x30] sm:$0xff] }
 0x22f   : > { %1302 = vmatprep.subr.bf16.mxu1 %v1396_v5 }
 0x230   : > { %1285 = vmatpush3.bf16.msra.mxu0 %v883_v13 }
 0x231   : > { %1286 = vmatprep.subr.bf16.mxu0 %v1396_v5 }
 0x232   : > { %1303 = vmatpush3.bf16.msra.mxu1 %v1368_v12 }
 0x233   : > { %1304 = vmatprep.subr.bf16.mxu1 %v1396_v5 }
 0x234   : > { %1287 = vmatpush3.bf16.msra.mxu0 %v884_v15 }
 0x235   : > { %1288 = vmatprep.subr.bf16.mxu0 %v1396_v5 }
 0x236   : > { %1305 = vmatpush3.bf16.msra.mxu1 %v1369_v14 }
 0x237   : > { %1306 = vmatprep.subr.bf16.mxu1 %v1396_v5 }
 0x238   : > { %1289 = vmatpush3.bf16.msra.mxu0 %v885_v17 }
 0x23a   : > { %1307 = vmatpush3.bf16.msra.mxu1 %v1370_v16 }
 0x23b   : > { %1308 = vmatprep.subr.bf16.mxu1 %v1396_v5  ;;  %1291 = vmatmul.mubr.bf16.vlgmr.msra.gmra.mrb[0].mxu0 %v877_v18 }
 0x23e   : > { %1309 = vmatpush3.bf16.msra.mxu1 %v1371_v19 }
 0x30e   : > { %v920_v20 = vpop.f32.mrb[0].mxu0 }
 0x30f   : > { %v926_v21 = vpack.c.bf16 %v920_v20, %v920_v20  ;;  %v1292_v22 = vpop.f32.mrb[1].mxu0 }
 0x310   : > { %v923_v23 = vpop.f32.mrb[2].mxu0 }
 0x311   : > { %v1293_v24 = vpop.f32.mrb[3].mxu0  ;;  %1311 = vmatmul.mubr.bf16.vlgmr.msra.gmra.mrb[0].mxu1 %v926_v21 }
 0x3e4   : > { %v1032_v26 = vpop.f32.mrb[0].mxu1 }
 0x3e5   : > { %v1033_v27 = vadd.f32 %v1146_v25, %v1032_v26  ;;  %v1312_v28 = vpop.f32.mrb[1].mxu1 }
 0x3e6   : > { %v1035_v29 = vpop.f32.mrb[2].mxu1 }
 0x3e7   : > { %1038 = vst [vmem:[%s1637_s8] sm:$0xff] %v1033_v27  ;;  %v1313_v30 = vpop.f32.mrb[3].mxu1 }
 0x3e8 PF: > { %s18_s29 = sadd.s32 1, %s1394_s29   ;;  %s1638_s27 = smov %s1390_s28 }
 0x3e9   : > { %p15_p7 = scmp.ge.s32.totalorder %s18_s29, 5   ;;  %s1639_s28 = smov %s1641_s30 }
 0x3eb   :  { %17 = sbr.rel (!%p15_p7) target bundleno = 2 (0x2), region = 100 }

</bundles_post_ra>
